<compile_context>
chip_gen: v6e
topology: v6e:2x2x1
jax: 0.10.0
libtpu: 0.0.40
codegen_flags: <defaults>
</compile_context>

<pallas_src>
import functools

import jax
import jax.numpy as jnp
from jax.experimental import pallas as pl
from jax.experimental.pallas import tpu as pltpu

INPUT_SIZE = 20
HIDDEN_SIZE = 100
NUM_CLASSES = 1
BATCH = 8

PAD_HID = 128       # 100 -> 128 lanes (also used for the padded output lanes)
MAX_TM = 256        # batch tile cap (v6e/v7x MXU is 2x256^2; v5e just does 2 passes)


def _round_up(x, m):
    return (x + m - 1) // m * m


def mlp_kernel(x_ref, w1_ref, wh_ref, b_ref, o_ref):
    # x: (TM, 20) f32 -> bf16 for the MXU (cast done in-kernel, no wrapper HLO).
    x = x_ref[...].astype(jnp.bfloat16)

    # Layer 1 + ReLU   (bf16 operands, f32 accumulate; K=20 padded by Mosaic)
    h = jnp.dot(x, w1_ref[...], preferred_element_type=jnp.float32) + b_ref[0:1, :]
    h = jnp.maximum(h, 0.0)

    # Layer 2 + ReLU
    h = jnp.dot(h.astype(jnp.bfloat16), wh_ref[0],
                preferred_element_type=jnp.float32) + b_ref[1:2, :]
    h = jnp.maximum(h, 0.0)

    # Layer 3 + ReLU
    h = jnp.dot(h.astype(jnp.bfloat16), wh_ref[1],
                preferred_element_type=jnp.float32) + b_ref[2:3, :]
    h = jnp.maximum(h, 0.0)

    # Layer 4 (no activation) — lane-dense (TM, 128) f32 store.
    o_ref[...] = jnp.dot(h.astype(jnp.bfloat16), wh_ref[2],
                         preferred_element_type=jnp.float32) + b_ref[3:4, :]


def _pad_weight(w, rows, cols):
    """Zero-pad a (in, out) weight to (rows, cols) and cast to bf16."""
    r, c = w.shape
    wp = jnp.zeros((rows, cols), dtype=jnp.float32).at[:r, :c].set(w)
    return wp.astype(jnp.bfloat16)


def _pad_bias(b, cols):
    """Zero-pad a (1, out) bias to (cols,); kept f32 (added post-accumulate)."""
    c = b.shape[-1]
    return jnp.zeros((cols,), dtype=jnp.float32).at[:c].set(b[0])


def pack_params(params):
    """Pack the 4 linear layers into 3 kernel operands.

    Returns:
      w1: (INPUT_SIZE, 128) bf16
      wh: (3, 128, 128)     bf16   (w2, w3, w4-padded)
      b:  (4, 128)          f32    (b1, b2, b3, b4-padded)
    """
    (w1, b1), (w2, b2), (w3, b3), (w4, b4) = params
    w1p = _pad_weight(w1, INPUT_SIZE, PAD_HID)
    wh = jnp.stack([
        _pad_weight(w2, PAD_HID, PAD_HID),
        _pad_weight(w3, PAD_HID, PAD_HID),
        _pad_weight(w4, PAD_HID, PAD_HID),
    ])
    b = jnp.stack([
        _pad_bias(b1, PAD_HID),
        _pad_bias(b2, PAD_HID),
        _pad_bias(b3, PAD_HID),
        _pad_bias(b4, PAD_HID),
    ])
    return w1p, wh, b


@jax.jit
def neural_net_forward(x, w1, wh, b):
    """Full NeuralNet forward in one pallas_call, jitted end-to-end.

    Weights stay VMEM-resident across batch-tile grid steps (constant index_map);
    only the activation tiles stream.
    """
    batch = x.shape[0]
    tm = min(_round_up(batch, 8), MAX_TM)
    padded_batch = _round_up(batch, tm)
    if padded_batch != batch:
        x = jnp.pad(x, ((0, padded_batch - batch), (0, 0)))
    grid = (padded_batch // tm,)

    flops = 2 * padded_batch * (INPUT_SIZE * PAD_HID + 3 * PAD_HID * PAD_HID)
    bytes_accessed = (
        padded_batch * INPUT_SIZE * 4          # x (f32)
        + INPUT_SIZE * PAD_HID * 2             # w1 (bf16)
        + 3 * PAD_HID * PAD_HID * 2            # w2/w3/w4 (bf16)
        + 4 * PAD_HID * 4                      # biases (f32)
        + padded_batch * PAD_HID * 4           # output (f32)
    )

    out_padded = pl.pallas_call(
        mlp_kernel,
        out_shape=jax.ShapeDtypeStruct((padded_batch, PAD_HID), jnp.float32),
        grid=grid,
        in_specs=[
            pl.BlockSpec((tm, INPUT_SIZE), lambda i: (i, 0)),            # x tile
            pl.BlockSpec((INPUT_SIZE, PAD_HID), lambda i: (0, 0)),       # w1 resident
            pl.BlockSpec((3, PAD_HID, PAD_HID), lambda i: (0, 0, 0)),    # w2..w4 resident
            pl.BlockSpec((4, PAD_HID), lambda i: (0, 0)),                # biases resident
        ],
        out_specs=pl.BlockSpec((tm, PAD_HID), lambda i: (i, 0)),
        compiler_params=pltpu.CompilerParams(
            dimension_semantics=("parallel",)),
        cost_estimate=pl.CostEstimate(flops=flops, transcendentals=0,
                                      bytes_accessed=bytes_accessed),
    )(x, w1, wh, b)

    # Only the first `batch` rows / first NUM_CLASSES lanes are real.
    return out_padded[:batch, :NUM_CLASSES]


def init_linear(key, in_features, out_features):
    """Deterministic init mimicking torch.nn.Linear (uniform +/- 1/sqrt(fan_in)).

    Weight is returned already transposed to (in_features, out_features).
    """
    k_w, k_b = jax.random.split(key)
    bound = 1.0 / (in_features ** 0.5)
    w = jax.random.uniform(k_w, (in_features, out_features),
                           minval=-bound, maxval=bound, dtype=jnp.float32)
    b = jax.random.uniform(k_b, (1, out_features),
                           minval=-bound, maxval=bound, dtype=jnp.float32)
    return w, b


def make_params(key):
    k1, k2, k3, k4 = jax.random.split(key, 4)
    return (
        init_linear(k1, INPUT_SIZE, HIDDEN_SIZE),
        init_linear(k2, HIDDEN_SIZE, HIDDEN_SIZE),
        init_linear(k3, HIDDEN_SIZE, HIDDEN_SIZE),
        init_linear(k4, HIDDEN_SIZE, NUM_CLASSES),
    )


def reference_forward_f32(x, params):
    (w1, b1), (w2, b2), (w3, b3), (w4, b4) = params
    h = jnp.maximum(x @ w1 + b1, 0.0)
    h = jnp.maximum(h @ w2 + b2, 0.0)
    h = jnp.maximum(h @ w3 + b3, 0.0)
    return h @ w4 + b4


def reference_forward_bf16(x, params):
    """Same bf16-operand / f32-accumulate math as the kernel (tight check)."""
    (w1, b1), (w2, b2), (w3, b3), (w4, b4) = params
    bf = jnp.bfloat16
    h = x.astype(bf)
    h = jnp.maximum(jnp.dot(h, w1.astype(bf),
                            preferred_element_type=jnp.float32) + b1, 0.0)
    h = jnp.maximum(jnp.dot(h.astype(bf), w2.astype(bf),
                            preferred_element_type=jnp.float32) + b2, 0.0)
    h = jnp.maximum(jnp.dot(h.astype(bf), w3.astype(bf),
                            preferred_element_type=jnp.float32) + b3, 0.0)
    return jnp.dot(h.astype(bf), w4.astype(bf),
                   preferred_element_type=jnp.float32) + b4


if __name__ == "__main__":
    key = jax.random.PRNGKey(0)
    k_params, k_x = jax.random.split(key)
    params = make_params(k_params)
    w1p, whp, bp = pack_params(params)
    x = jax.random.normal(k_x, (BATCH, INPUT_SIZE), dtype=jnp.float32)

    out = neural_net_forward(x, w1p, whp, bp)
    out = jax.block_until_ready(out)
    assert out.shape == (BATCH, NUM_CLASSES)

    # Tight check vs. a reference doing the same bf16-operand math.
    ref_bf16 = reference_forward_bf16(x, params)
    assert jnp.allclose(out, ref_bf16, atol=2e-3, rtol=2e-3), \
        "mismatch vs bf16-matched reference"

    # Loose sanity check vs. the pure-f32 PyTorch-equivalent forward.
    ref_f32 = reference_forward_f32(x, params)
    assert jnp.allclose(out, ref_f32, atol=5e-2, rtol=5e-2), \
        "mismatch vs f32 reference beyond bf16 tolerance"

    print("KERNEL_OK")
</pallas_src>

<mosaic_0001>
module attributes {stable_mosaic.version = 11 : i64} {
  func.func @mlp_kernel(%arg0: i32, %arg1: memref<8x20xf32, #tpu.memory_space<vmem>>, %arg2: memref<20x128xbf16, #tpu.memory_space<vmem>>, %arg3: memref<3x128x128xbf16, #tpu.memory_space<vmem>>, %arg4: memref<4x128xf32, #tpu.memory_space<vmem>>, %arg5: memref<8x128xf32, #tpu.memory_space<vmem>>) attributes {dimension_semantics = [#tpu.dimension_semantics<parallel>], iteration_bounds = array<i64: 1>, scalar_prefetch = 0 : i64, scratch_operands = 0 : i64, tpu.core_type = #tpu.core_type<tc>, window_params = [{transform_indices = @transform_0, window_bounds = array<i64: 8, 20>}, {pipeline_mode = #tpu.pipeline_mode<synchronous>, transform_indices = @transform_1, window_bounds = array<i64: 20, 128>}, {pipeline_mode = #tpu.pipeline_mode<synchronous>, transform_indices = @transform_2, window_bounds = array<i64: 3, 128, 128>}, {pipeline_mode = #tpu.pipeline_mode<synchronous>, transform_indices = @transform_3, window_bounds = array<i64: 4, 128>}, {transform_indices = @transform_4, window_bounds = array<i64: 8, 128>}]} {
    %c0 = arith.constant 0 : index
    %c0_0 = arith.constant 0 : index
    %0 = vector.load %arg1[%c0, %c0_0] : memref<8x20xf32, #tpu.memory_space<vmem>>, vector<8x20xf32>
    %1 = arith.truncf %0 : vector<8x20xf32> to vector<8x20xbf16>
    %c0_1 = arith.constant 0 : index
    %c0_2 = arith.constant 0 : index
    %2 = vector.load %arg2[%c0_1, %c0_2] : memref<20x128xbf16, #tpu.memory_space<vmem>>, vector<20x128xbf16>
    %cst = arith.constant dense<0.000000e+00> : vector<8x128xf32>
    %3 = tpu.matmul %1, %2, %cst {dimension_numbers = #tpu.dot_dimension_numbers<[1], [0], [0], [1], [0, 0, 1, 1], [], []>} : vector<8x20xbf16>, vector<20x128xbf16>, vector<8x128xf32> -> vector<8x128xf32>
    %c0_3 = arith.constant 0 : index
    %c0_4 = arith.constant 0 : index
    %4 = vector.load %arg4[%c0_3, %c0_4] : memref<4x128xf32, #tpu.memory_space<vmem>>, vector<1x128xf32>
    %5 = vector.broadcast %4 : vector<1x128xf32> to vector<8x128xf32>
    %6 = arith.addf %3, %5 : vector<8x128xf32>
    %cst_5 = arith.constant 0.000000e+00 : f32
    %7 = vector.broadcast %cst_5 : f32 to vector<8x128xf32>
    %8 = arith.maximumf %6, %7 : vector<8x128xf32>
    %9 = arith.truncf %8 : vector<8x128xf32> to vector<8x128xbf16>
    %c0_6 = arith.constant 0 : index
    %c0_7 = arith.constant 0 : index
    %c0_8 = arith.constant 0 : index
    %10 = vector.load %arg3[%c0_6, %c0_7, %c0_8] : memref<3x128x128xbf16, #tpu.memory_space<vmem>>, vector<1x128x128xbf16>
    %11 = vector.shape_cast %10 : vector<1x128x128xbf16> to vector<128x128xbf16>
    %cst_9 = arith.constant dense<0.000000e+00> : vector<8x128xf32>
    %12 = tpu.matmul %9, %11, %cst_9 {dimension_numbers = #tpu.dot_dimension_numbers<[1], [0], [0], [1], [0, 0, 1, 1], [], []>} : vector<8x128xbf16>, vector<128x128xbf16>, vector<8x128xf32> -> vector<8x128xf32>
    %c1 = arith.constant 1 : index
    %c0_10 = arith.constant 0 : index
    %13 = vector.load %arg4[%c1, %c0_10] : memref<4x128xf32, #tpu.memory_space<vmem>>, vector<1x128xf32>
    %14 = vector.broadcast %13 : vector<1x128xf32> to vector<8x128xf32>
    %15 = arith.addf %12, %14 : vector<8x128xf32>
    %cst_11 = arith.constant 0.000000e+00 : f32
    %16 = vector.broadcast %cst_11 : f32 to vector<8x128xf32>
    %17 = arith.maximumf %15, %16 : vector<8x128xf32>
    %18 = arith.truncf %17 : vector<8x128xf32> to vector<8x128xbf16>
    %c1_12 = arith.constant 1 : index
    %c0_13 = arith.constant 0 : index
    %c0_14 = arith.constant 0 : index
    %19 = vector.load %arg3[%c1_12, %c0_13, %c0_14] : memref<3x128x128xbf16, #tpu.memory_space<vmem>>, vector<1x128x128xbf16>
    %20 = vector.shape_cast %19 : vector<1x128x128xbf16> to vector<128x128xbf16>
    %cst_15 = arith.constant dense<0.000000e+00> : vector<8x128xf32>
    %21 = tpu.matmul %18, %20, %cst_15 {dimension_numbers = #tpu.dot_dimension_numbers<[1], [0], [0], [1], [0, 0, 1, 1], [], []>} : vector<8x128xbf16>, vector<128x128xbf16>, vector<8x128xf32> -> vector<8x128xf32>
    %c2 = arith.constant 2 : index
    %c0_16 = arith.constant 0 : index
    %22 = vector.load %arg4[%c2, %c0_16] : memref<4x128xf32, #tpu.memory_space<vmem>>, vector<1x128xf32>
    %23 = vector.broadcast %22 : vector<1x128xf32> to vector<8x128xf32>
    %24 = arith.addf %21, %23 : vector<8x128xf32>
    %cst_17 = arith.constant 0.000000e+00 : f32
    %25 = vector.broadcast %cst_17 : f32 to vector<8x128xf32>
    %26 = arith.maximumf %24, %25 : vector<8x128xf32>
    %27 = arith.truncf %26 : vector<8x128xf32> to vector<8x128xbf16>
    %c2_18 = arith.constant 2 : index
    %c0_19 = arith.constant 0 : index
    %c0_20 = arith.constant 0 : index
    %28 = vector.load %arg3[%c2_18, %c0_19, %c0_20] : memref<3x128x128xbf16, #tpu.memory_space<vmem>>, vector<1x128x128xbf16>
    %29 = vector.shape_cast %28 : vector<1x128x128xbf16> to vector<128x128xbf16>
    %cst_21 = arith.constant dense<0.000000e+00> : vector<8x128xf32>
    %30 = tpu.matmul %27, %29, %cst_21 {dimension_numbers = #tpu.dot_dimension_numbers<[1], [0], [0], [1], [0, 0, 1, 1], [], []>} : vector<8x128xbf16>, vector<128x128xbf16>, vector<8x128xf32> -> vector<8x128xf32>
    %c3 = arith.constant 3 : index
    %c0_22 = arith.constant 0 : index
    %31 = vector.load %arg4[%c3, %c0_22] : memref<4x128xf32, #tpu.memory_space<vmem>>, vector<1x128xf32>
    %32 = vector.broadcast %31 : vector<1x128xf32> to vector<8x128xf32>
    %33 = arith.addf %30, %32 : vector<8x128xf32>
    %c0_23 = arith.constant 0 : index
    %c0_24 = arith.constant 0 : index
    %34 = vector.load %arg5[%c0_23, %c0_24] : memref<8x128xf32, #tpu.memory_space<vmem>>, vector<8x128xf32>
    tpu.vector_store %arg5[%c0_23, %c0_24], %33 {strides = array<i32>} : memref<8x128xf32, #tpu.memory_space<vmem>>, vector<8x128xf32>,
    return
  }
  func.func @transform_0(%arg0: i32) -> (i32, i32) {
    %c0_i32 = arith.constant 0 : i32
    %c0_i32_0 = arith.constant 0 : i32
    return %arg0, %c0_i32 : i32, i32
  }
  func.func @transform_1(%arg0: i32) -> (i32, i32) {
    %c0_i32 = arith.constant 0 : i32
    %c0_i32_0 = arith.constant 0 : i32
    %c0_i32_1 = arith.constant 0 : i32
    return %c0_i32, %c0_i32_0 : i32, i32
  }
  func.func @transform_2(%arg0: i32) -> (i32, i32, i32) {
    %c0_i32 = arith.constant 0 : i32
    %c0_i32_0 = arith.constant 0 : i32
    %c0_i32_1 = arith.constant 0 : i32
    %c0_i32_2 = arith.constant 0 : i32
    return %c0_i32, %c0_i32_0, %c0_i32_1 : i32, i32, i32
  }
  func.func @transform_3(%arg0: i32) -> (i32, i32) {
    %c0_i32 = arith.constant 0 : i32
    %c0_i32_0 = arith.constant 0 : i32
    %c0_i32_1 = arith.constant 0 : i32
    return %c0_i32, %c0_i32_0 : i32, i32
  }
  func.func @transform_4(%arg0: i32) -> (i32, i32) {
    %c0_i32 = arith.constant 0 : i32
    %c0_i32_0 = arith.constant 0 : i32
    return %arg0, %c0_i32 : i32, i32
  }
}

</mosaic_0001>

<bundles_post_ra>
// kernel: neural_net_forward.1
= control target key start
LH: loop header
LB: loop body
LE: loop exit
PB: predicated region body
PF: predicated region fallthrough
CT: control target
= control target key end

     0   :  { %9 = vsyncpa [#allocation3], 0  ;;  %s782_s0 = inlined_call_operand.hbm [shape: f32[8,20], index: 0, kind: input, shape index: {}]   ;;  %s783_s1 = inlined_call_operand.hbm [shape: bf16[20,128], index: 1, kind: input, shape index: {}]   ;;  %s784_s2 = inlined_call_operand.hbm [shape: bf16[3,128,128], index: 2, kind: input, shape index: {}]   ;;  %s785_s3 = inlined_call_operand.vmem [shape: f32[4,128], index: 3, kind: input, shape index: {}]   ;;  %s786_s4 = inlined_call_operand.vmem [shape: f32[8,128], index: 4, kind: output, shape index: {}]  }
   0x1   :  { %10 = vsyncpa [#allocation5], 0  ;;  %s692_s15 = smov [#allocation4]  }
   0x2   :  { %s26_s16 = sshll.u32 %s692_s15, 4  ;;  %s27_s16 = int_to_ptr.vmem [resolvable:$true] %s26_s16 }
   0x3   :  { %s636_s17 = scalar_lea.vmem %s27_s16, 192  ;;  %p641_p1 = scmp.lt.s32.totalorder %s27_s16, %s27_s16 }
   0x4   :  { %p637_p0 = scmp.ne.s32.totalorder %s27_s16, %s636_s17  ;;  %p642_p2 = scmp.lt.s32.totalorder %s636_s17, %s636_s17 }
   0x6   :  { %p643_p3 = por %p642_p2, %p641_p1 }
   0x8   :  { %p644_p4 = pnand %p643_p3, %p637_p0 }
   0xa   :  { %647 = shalt.err (!%p644_p4)
}
   0xb   :  { %s693_s18 = smov 64   ;;  %s694_s19 = smov 4  }
   0xc   :  { %32 = dma.hbm_to_vmem [thread:$0]  %s783_s1, 192, %s27_s16, [#allocation5], %s693_s18, %s693_s18, %s694_s19  }
   0xd   :  { %s695_s22 = smov [#allocation2]   ;;  %s696_s24 = smov [#allocation6]  }
   0xe   :  { %s17_s23 = sshll.u32 %s695_s22, 4  ;;  %s38_s25 = sshll.u32 %s696_s24, 4  ;;  %s18_s23 = int_to_ptr.vmem [resolvable:$true] %s17_s23  ;;  %s39_s25 = int_to_ptr.vmem [resolvable:$true] %s38_s25 }
   0xf   :  { %s656_s26 = scalar_lea.vmem %s18_s23, 128  ;;  %p661_p6 = scmp.lt.s32.totalorder %s18_s23, %s18_s23 }
  0x10   :  { %p657_p5 = scmp.ne.s32.totalorder %s18_s23, %s656_s26  ;;  %p662_p7 = scmp.lt.s32.totalorder %s656_s26, %s656_s26 }
  0x12   :  { %p663_p8 = por %p662_p7, %p661_p6 }
  0x14   :  { %p664_p9 = pnand %p663_p8, %p657_p5 }
  0x16   :  { %667 = shalt.err (!%p664_p9)
}
  0x17   :  { %20 = dma.hbm_to_vmem [thread:$0]  %s782_s0, 128, %s18_s23, [#allocation3]  }
  0x18   :  { %s676_s29 = scalar_lea.vmem %s39_s25, 3072  ;;  %p681_p11 = scmp.lt.s32.totalorder %s39_s25, %s39_s25 }
  0x19   :  { %p677_p10 = scmp.ne.s32.totalorder %s39_s25, %s676_s29  ;;  %p682_p12 = scmp.lt.s32.totalorder %s676_s29, %s676_s29 }
  0x1b   :  { %p683_p13 = por %p682_p12, %p681_p11 }
  0x1d   :  { %p684_p0 = pnand %p683_p13, %p677_p10 }
  0x1f   :  { %687 = shalt.err (!%p684_p0)
}
  0x20   :  { %44 = dma.hbm_to_vmem [thread:$0]  %s784_s2, 3072, %s39_s25, [#allocation5], %s693_s18, %s693_s18, %s694_s19  }
  0x21   :  { %688 = dma.done.wait [#allocation3], 128  }
  0x22   :  { %689 = vsyncadd [#allocation3], 4294967168 }
  0x23   :  { %690 = dma.done.wait [#allocation5], 3264  }
  0x24   :  { %691 = vsyncadd [#allocation5], 4294964032  ;;  %v697_v0 = vmov 0.0   ;;  %vm698_vm0 = vmmov 0   ;;  %vm80_vm1 = vcmask 1041408   ;;  %v603_v2 = vld [vmem:[#allocation4] sm:$0xff]  }
  0x25   :  { %527 = vmatprep.subr.bf16.mxu0 %v697_v0  ;;  %531 = vmatprep.mubr.msk.bf16.mxu0 %vm698_vm0, %v697_v0  ;;  %v602_v1 = vld [vmem:[#allocation4 + $0x8] ss:$0 sps:$4 sm:$0x33]   ;;  %v57_v5 = vld [vmem:[#allocation2] sm:$0xff]  ;;  %vm76_vm2 = vcmask 162816   ;;  %v607_v9 = vld [vmem:[#allocation6 + $0x20] sm:$0xff]  }
  0x26   :  { %535 = vmatprep.subr.bf16.mxu1 %v697_v0  ;;  %551 = vmatprep.mubr.msk.bf16.mxu1 %vm698_vm0, %v697_v0  ;;  %v82_v3 = vsel %vm80_vm1, %v602_v1, 0  ;;  %v604_v4 = vld [vmem:[#allocation6 + $0x38] sm:$0xff]   ;;  %v605_v6 = vld [vmem:[#allocation6 + $0x30] sm:$0xff]   ;;  %v58_v7 = vpack.c.bf16 %v57_v5, %v57_v5  ;;  %v606_v8 = vld [vmem:[#allocation6 + $0x28] sm:$0xff]  }
  0x27   :  { %528 = vmatpush3.bf16.msra.mxu0 %v82_v3  ;;  %536 = vmatpush3.bf16.msra.mxu1 %v604_v4  ;;  %v608_v10 = vld [vmem:[#allocation6 + $0x18] sm:$0xff]   ;;  %v609_v11 = vld [vmem:[#allocation6 + $0x10] sm:$0xff]   ;;  %v610_v12 = vld [vmem:[#allocation6 + $0x8] sm:$0xff]  }
  0x28   :  { %529 = vmatprep.subr.bf16.mxu0 %v697_v0  ;;  %537 = vmatprep.subr.bf16.mxu1 %v697_v0  ;;  %v611_v13 = vld [vmem:[#allocation6] sm:$0xff]   ;;  %v612_v14 = vld [vmem:[#allocation6 + $0x78] sm:$0xff]   ;;  %v613_v15 = vld [vmem:[#allocation6 + $0x70] sm:$0xff]  }
  0x29   :  { %v614_v16 = vld [vmem:[#allocation6 + $0x68] sm:$0xff]   ;;  %v615_v17 = vld [vmem:[#allocation6 + $0x60] sm:$0xff]   ;;  %v616_v18 = vld [vmem:[#allocation6 + $0x58] sm:$0xff]  }
  0x2a   :  { %v617_v19 = vld [vmem:[#allocation6 + $0x50] sm:$0xff]   ;;  %v466_v20 = vld [vmem:[%s785_s3] ss:$0 sm:$0xff]  ;;  %v619_v29 = vld [vmem:[#allocation6 + $0x40] sm:$0xff]  }
  0x2b   :  { %530 = vmatpush3.bf16.msra.mxu0 %v603_v2  ;;  %538 = vmatpush3.bf16.msra.mxu1 %v605_v6  ;;  %v618_v28 = vld [vmem:[#allocation6 + $0x48] sm:$0xff]   ;;  %v620_v30 = vld [vmem:[#allocation6 + $0xb8] sm:$0xff]   ;;  %v621_v31 = vld [vmem:[#allocation6 + $0xb0] sm:$0xff]  }
  0x2c   :  { %555 = vmatprep.subr.bf16.mxu0 %v697_v0  ;;  %539 = vmatprep.subr.bf16.mxu1 %v697_v0  ;;  %v622_v32 = vld [vmem:[#allocation6 + $0xa8] sm:$0xff]   ;;  %v623_v33 = vld [vmem:[#allocation6 + $0xa0] sm:$0xff]   ;;  %v624_v34 = vld [vmem:[#allocation6 + $0x98] sm:$0xff]  }
  0x2d   :  { %v625_v35 = vld [vmem:[#allocation6 + $0x90] sm:$0xff]   ;;  %v470_v36 = vld [vmem:[%s785_s3 + $0x1] ss:$0 sm:$0xff]  ;;  %v627_v45 = vld [vmem:[#allocation6 + $0x80] sm:$0xff]  }
  0x2e   :  { %532 = vmatmul.mubr.msk.bf16.vlgmr.msra.gmra.mxu0 %vm76_vm2, %v58_v7  ;;  %v626_v44 = vld [vmem:[#allocation6 + $0x88] sm:$0xff]  }
  0x2f   :  { %571 = vmatprep.mubr.msk.bf16.mxu0 %vm698_vm0, %v697_v0  ;;  %540 = vmatpush3.bf16.msra.mxu1 %v606_v8  ;;  %v479_v46 = vld [vmem:[%s785_s3 + $0x2] ss:$0 sm:$0xff]  ;;  %v488_v54 = vld [vmem:[%s785_s3 + $0x3] ss:$0 sm:$0xff] }
  0x30   :  { %541 = vmatprep.subr.bf16.mxu1 %v697_v0  ;;  %556 = vmatpush3.bf16.msra.mxu0 %v612_v14 }
  0x31   :  { %557 = vmatprep.subr.bf16.mxu0 %v697_v0 }
  0x33   :  { %542 = vmatpush3.bf16.msra.mxu1 %v607_v9 }
  0x34   :  { %543 = vmatprep.subr.bf16.mxu1 %v697_v0  ;;  %558 = vmatpush3.bf16.msra.mxu0 %v613_v15 }
  0x35   :  { %559 = vmatprep.subr.bf16.mxu0 %v697_v0 }
  0x37   :  { %544 = vmatpush3.bf16.msra.mxu1 %v608_v10 }
  0x38   :  { %545 = vmatprep.subr.bf16.mxu1 %v697_v0  ;;  %560 = vmatpush3.bf16.msra.mxu0 %v614_v16 }
  0x39   :  { %561 = vmatprep.subr.bf16.mxu0 %v697_v0 }
  0x3b   :  { %546 = vmatpush3.bf16.msra.mxu1 %v609_v11 }
  0x3c   :  { %547 = vmatprep.subr.bf16.mxu1 %v697_v0  ;;  %562 = vmatpush3.bf16.msra.mxu0 %v615_v17 }
  0x3d   :  { %563 = vmatprep.subr.bf16.mxu0 %v697_v0 }
  0x3f   :  { %548 = vmatpush3.bf16.msra.mxu1 %v610_v12 }
  0x40   :  { %549 = vmatprep.subr.bf16.mxu1 %v697_v0  ;;  %564 = vmatpush3.bf16.msra.mxu0 %v616_v18 }
  0x41   :  { %565 = vmatprep.subr.bf16.mxu0 %v697_v0 }
  0x43   :  { %550 = vmatpush3.bf16.msra.mxu1 %v611_v13 }
  0x44   :  { %575 = vmatprep.subr.bf16.mxu1 %v697_v0  ;;  %566 = vmatpush3.bf16.msra.mxu0 %v617_v19 }
  0x45   :  { %567 = vmatprep.subr.bf16.mxu0 %v697_v0 }
  0x48   :  { %568 = vmatpush3.bf16.msra.mxu0 %v618_v28 }
  0x49   :  { %569 = vmatprep.subr.bf16.mxu0 %v697_v0 }
  0x4c   :  { %570 = vmatpush3.bf16.msra.mxu0 %v619_v29 }
  0xee   :  { %v118_v21 = vpop.f32.mrf.mxu0 }
  0xef   :  { %v119_v22 = vadd.f32 %v466_v20, %v118_v21 }
  0xf0   :  { %v533_v23 = vpop.f32.mrf.mxu0 }
  0xf1   :  { %v124_v24 = vmax.f32 %v119_v22, 0.0 }
  0xf2   :  { %v121_v25 = vpop.f32.mrf.mxu0 }
  0xf3   :  { %v125_v26 = vpack.c.bf16 %v124_v24, %v124_v24 }
  0xf4   :  { %v534_v27 = vpop.f32.mrf.mxu0 }
  0xf5   :  { %552 = vmatmul.mubr.bf16.vlgmr.msra.gmra.mxu1 %v125_v26 }
  0xf6   :  { %591 = vmatprep.mubr.msk.bf16.mxu1 %vm698_vm0, %v697_v0  ;;  %576 = vmatpush3.bf16.msra.mxu1 %v620_v30 }
  0xf7   :  { %577 = vmatprep.subr.bf16.mxu1 %v697_v0 }
  0xfa   :  { %578 = vmatpush3.bf16.msra.mxu1 %v621_v31 }
  0xfb   :  { %579 = vmatprep.subr.bf16.mxu1 %v697_v0 }
  0xfe   :  { %580 = vmatpush3.bf16.msra.mxu1 %v622_v32 }
  0xff   :  { %581 = vmatprep.subr.bf16.mxu1 %v697_v0 }
 0x102   :  { %582 = vmatpush3.bf16.msra.mxu1 %v623_v33 }
 0x103   :  { %583 = vmatprep.subr.bf16.mxu1 %v697_v0 }
 0x106   :  { %584 = vmatpush3.bf16.msra.mxu1 %v624_v34 }
 0x107   :  { %585 = vmatprep.subr.bf16.mxu1 %v697_v0 }
 0x10a   :  { %586 = vmatpush3.bf16.msra.mxu1 %v625_v35 }
 0x10b   :  { %587 = vmatprep.subr.bf16.mxu1 %v697_v0 }
 0x10e   :  { %588 = vmatpush3.bf16.msra.mxu1 %v626_v44 }
 0x10f   :  { %589 = vmatprep.subr.bf16.mxu1 %v697_v0 }
 0x112   :  { %590 = vmatpush3.bf16.msra.mxu1 %v627_v45 }
 0x1b5   :  { %v229_v37 = vpop.f32.mrf.mxu1 }
 0x1b6   :  { %v230_v38 = vadd.f32 %v470_v36, %v229_v37 }
 0x1b7   :  { %v553_v39 = vpop.f32.mrf.mxu1 }
 0x1b8   :  { %v235_v40 = vmax.f32 %v230_v38, 0.0 }
 0x1b9   :  { %v232_v41 = vpop.f32.mrf.mxu1 }
 0x1ba   :  { %v236_v42 = vpack.c.bf16 %v235_v40, %v235_v40 }
 0x1bb   :  { %v554_v43 = vpop.f32.mrf.mxu1 }
 0x1bc   :  { %572 = vmatmul.mubr.bf16.vlgmr.msra.gmra.mxu0 %v236_v42 }
 0x27c   :  { %v341_v47 = vpop.f32.mrf.mxu0 }
 0x27d   :  { %v342_v48 = vadd.f32 %v479_v46, %v341_v47 }
 0x27e   :  { %v573_v49 = vpop.f32.mrf.mxu0 }
 0x27f   :  { %v347_v50 = vmax.f32 %v342_v48, 0.0 }
 0x280   :  { %v344_v51 = vpop.f32.mrf.mxu0 }
 0x281   :  { %v348_v52 = vpack.c.bf16 %v347_v50, %v347_v50 }
 0x282   :  { %v574_v53 = vpop.f32.mrf.mxu0 }
 0x283   :  { %592 = vmatmul.mubr.bf16.vlgmr.msra.gmra.mxu1 %v348_v52 }
 0x343   :  { %v453_v55 = vpop.f32.mrf.mxu1 }
 0x344   :  { %v454_v56 = vadd.f32 %v488_v54, %v453_v55 }
 0x345   :  { %v593_v57 = vpop.f32.mrf.mxu1 }
 0x346   :  { %459 = vst [vmem:[%s786_s4] sm:$0xff] %v454_v56 }
 0x347   :  { %v456_v58 = vpop.f32.mrf.mxu1 }
 0x349   :  { %v594_v59 = vpop.f32.mrf.mxu1 }
 0x34a   :  { %464 = vsyncpa [#allocation3], 1 }
 0x34b   :  { %465 = vsyncpa [#allocation5], 1 }

</bundles_post_ra>
